<compile_context>
chip_gen: v5e
topology: v5e:2x2
jax: 0.10.0
libtpu: 0.0.40
codegen_flags: <defaults>
</compile_context>

<pallas_src>
import functools
import math

import jax
import jax.numpy as jnp
from jax.experimental import pallas as pl
from jax.experimental.pallas import tpu as pltpu


# ----------------------------------------------------------------------------
# Parameter construction (plain JAX) — mirrors GaussianSmoothing.__init__.
# The torch module's 2-D kernel is an outer product of two 1-D profiles,
# normalized by the total sum, so it is exactly separable:
#   kernel2d = (g0 / sum(g0)) (x) (g1 / sum(g1))
# ----------------------------------------------------------------------------
def make_gaussian_weights_1d(kernel_size, sigma, dim=2):
    if isinstance(kernel_size, (int, float)):
        kernel_size = [int(kernel_size)] * dim
    if isinstance(sigma, (int, float)):
        sigma = [float(sigma)] * dim
    assert dim == 2, "this kernel implements the dim=2 (spatial) case"

    kernels_1d = []
    for size, std in zip(kernel_size, sigma):
        grid = jnp.arange(size, dtype=jnp.float32)
        mean = (size - 1) / 2.0
        # NB: exponent matches the torch snippet: ((x - mean) / (2*std))**2
        g = (1.0 / (std * math.sqrt(2 * math.pi))) * jnp.exp(
            -(((grid - mean) / (2.0 * std)) ** 2)
        )
        kernels_1d.append(g / jnp.sum(g))
    kv, kh = kernels_1d  # vertical (H) taps, horizontal (W) taps
    return kv.astype(jnp.float32), kh.astype(jnp.float32)


# ----------------------------------------------------------------------------
# Pallas kernel: separable depthwise blur on a flattened (B, H*W) layout.
# ----------------------------------------------------------------------------
def _shift_left(a, s):
    """result[:, p] = a[:, p + s] for p + s < L.

    Wrapped values only ever land at positions corresponding to the last K-1
    rows/cols of each image, which the wrapper slices away.
    """
    if s == 0:
        return a
    return jnp.concatenate([a[:, s:], a[:, :s]], axis=1)


def _gauss_sep_kernel(kv_ref, kh_ref, x_ref, o_ref, *, row_stride, ksize):
    # kv_ref/kh_ref: SMEM (K,) f32 taps; x_ref/o_ref: VMEM (TILE_B, H*W)
    x = x_ref[...].astype(jnp.float32)
    # vertical pass: taps along H == lane shifts by multiples of W
    v = kv_ref[0] * x
    for di in range(1, ksize):
        v = v + kv_ref[di] * _shift_left(x, di * row_stride)
    # horizontal pass: taps along W == lane shifts by 1..K-1
    out = kh_ref[0] * v
    for dj in range(1, ksize):
        out = out + kh_ref[dj] * _shift_left(v, dj)
    o_ref[...] = out.astype(o_ref.dtype)


def _round_up(a, m):
    return (a + m - 1) // m * m


def gaussian_smoothing(x, kv, kh, *, tile_b=None):
    """Depthwise Gaussian blur (valid padding, stride 1, groups=C).

    x: (N, C, H, W); kv, kh: (K,) separable 1-D taps.
    Returns (N, C, H-K+1, W-K+1).
    """
    N, C, H, W = x.shape
    K = int(kv.shape[0])
    Ho, Wo = H - K + 1, W - K + 1
    B = N * C
    L = H * W

    x2 = x.reshape(B, L)  # pure metadata reshape (contiguous row-major)

    if tile_b is None:
        # ~1 MiB of input bytes per grid step; double-buffered in+out plus
        # in-kernel temporaries stays well under the 16/32 MiB scoped VMEM
        # defaults of v5e/v6e/v7x.
        bytes_per_img = L * x.dtype.itemsize
        tile_b = max(8, (1 << 20) // bytes_per_img)
        tile_b = _round_up(min(tile_b, _round_up(B, 8)), 8)
        # keep >= 2 grid steps when there is enough work (v7x has 2 TCs)
        if tile_b >= B and B >= 16:
            tile_b = _round_up((B + 1) // 2, 8)

    Bp = _round_up(B, tile_b)
    if Bp != B:
        x2 = jnp.pad(x2, ((0, Bp - B), (0, 0)))

    kernel = functools.partial(_gauss_sep_kernel, row_stride=W, ksize=K)

    out2 = pl.pallas_call(
        kernel,
        out_shape=jax.ShapeDtypeStruct((Bp, L), x.dtype),
        grid_spec=pltpu.PrefetchScalarGridSpec(
            num_scalar_prefetch=0,
            grid=(Bp // tile_b,),
            in_specs=[
                pl.BlockSpec(memory_space=pltpu.MemorySpace.SMEM),  # kv (K,)
                pl.BlockSpec(memory_space=pltpu.MemorySpace.SMEM),  # kh (K,)
                pl.BlockSpec((tile_b, L), lambda b: (b, 0)),
            ],
            out_specs=pl.BlockSpec((tile_b, L), lambda b: (b, 0)),
        ),
        compiler_params=pltpu.CompilerParams(
            dimension_semantics=("parallel",),
        ),
    )(kv, kh, x2)

    # Drop padded batch rows and the K-1 garbage rows/cols of each image.
    return out2[:B].reshape(N, C, H, W)[:, :, :Ho, :Wo]


if __name__ == "__main__":
    # Module config: channels=4, kernel_size=3, sigma=1.0, dim=2
    channels, kernel_size, sigma = 4, 3, 1.0
    kv, kh = make_gaussian_weights_1d(kernel_size, sigma, dim=2)

    key = jax.random.PRNGKey(0)
    x = jax.random.normal(key, (2, channels, 16, 16), dtype=jnp.float32)

    out = gaussian_smoothing(x, kv, kh)
    out = jax.block_until_ready(out)

    # Reference check: XLA grouped conv with the same (separable) 2-D kernel,
    # identical semantics to F.conv2d(..., groups=channels).
    weight2d = jnp.outer(kv, kh)                                   # (K, K)
    weight = jnp.broadcast_to(weight2d, (channels, 1) + weight2d.shape)
    ref = jax.lax.conv_general_dilated(
        x, weight,
        window_strides=(1, 1), padding="VALID",
        feature_group_count=channels,
        dimension_numbers=("NCHW", "OIHW", "NCHW"),
    )
    assert out.shape == (2, channels, 14, 14)
    assert jnp.allclose(out, ref, atol=1e-5, rtol=1e-5)

    print("KERNEL_OK")
</pallas_src>

<mosaic_0001>
module attributes {stable_mosaic.version = 11 : i64} {
  func.func @_gauss_sep_kernel(%arg0: i32, %arg1: memref<3xf32, #tpu.memory_space<smem>>, %arg2: memref<3xf32, #tpu.memory_space<smem>>, %arg3: memref<8x256xf32, #tpu.memory_space<vmem>>, %arg4: memref<8x256xf32, #tpu.memory_space<vmem>>) attributes {dimension_semantics = [#tpu.dimension_semantics<parallel>], iteration_bounds = array<i64: 1>, scalar_prefetch = 0 : i64, scratch_operands = 0 : i64, tpu.core_type = #tpu.core_type<tc>, window_params = [{transform_indices = @transform_0, window_bounds = array<i64: 3>}, {transform_indices = @transform_1, window_bounds = array<i64: 3>}, {transform_indices = @transform_2, window_bounds = array<i64: 8, 256>}, {transform_indices = @transform_3, window_bounds = array<i64: 8, 256>}]} {
    %c0 = arith.constant 0 : index
    %c0_0 = arith.constant 0 : index
    %0 = vector.load %arg3[%c0, %c0_0] : memref<8x256xf32, #tpu.memory_space<vmem>>, vector<8x256xf32>
    %c0_1 = arith.constant 0 : index
    %1 = memref.load %arg1[%c0_1] : memref<3xf32, #tpu.memory_space<smem>>
    %2 = vector.broadcast %1 : f32 to vector<8x256xf32>
    %3 = arith.mulf %2, %0 : vector<8x256xf32>
    %c1 = arith.constant 1 : index
    %4 = memref.load %arg1[%c1] : memref<3xf32, #tpu.memory_space<smem>>
    %5 = vector.extract_strided_slice %0 {offsets = [0, 16], sizes = [8, 240], strides = [1, 1]} : vector<8x256xf32> to vector<8x240xf32>
    %6 = vector.extract_strided_slice %0 {offsets = [0, 0], sizes = [8, 16], strides = [1, 1]} : vector<8x256xf32> to vector<8x16xf32>
    %7 = tpu.concatenate %5, %6 in 1 : vector<8x240xf32>, vector<8x16xf32> -> vector<8x256xf32>
    %8 = vector.broadcast %4 : f32 to vector<8x256xf32>
    %9 = arith.mulf %8, %7 : vector<8x256xf32>
    %10 = arith.addf %3, %9 : vector<8x256xf32>
    %c2 = arith.constant 2 : index
    %11 = memref.load %arg1[%c2] : memref<3xf32, #tpu.memory_space<smem>>
    %12 = vector.extract_strided_slice %0 {offsets = [0, 32], sizes = [8, 224], strides = [1, 1]} : vector<8x256xf32> to vector<8x224xf32>
    %13 = vector.extract_strided_slice %0 {offsets = [0, 0], sizes = [8, 32], strides = [1, 1]} : vector<8x256xf32> to vector<8x32xf32>
    %14 = tpu.concatenate %12, %13 in 1 : vector<8x224xf32>, vector<8x32xf32> -> vector<8x256xf32>
    %15 = vector.broadcast %11 : f32 to vector<8x256xf32>
    %16 = arith.mulf %15, %14 : vector<8x256xf32>
    %17 = arith.addf %10, %16 : vector<8x256xf32>
    %c0_2 = arith.constant 0 : index
    %18 = memref.load %arg2[%c0_2] : memref<3xf32, #tpu.memory_space<smem>>
    %19 = vector.broadcast %18 : f32 to vector<8x256xf32>
    %20 = arith.mulf %19, %17 : vector<8x256xf32>
    %c1_3 = arith.constant 1 : index
    %21 = memref.load %arg2[%c1_3] : memref<3xf32, #tpu.memory_space<smem>>
    %22 = vector.extract_strided_slice %17 {offsets = [0, 1], sizes = [8, 255], strides = [1, 1]} : vector<8x256xf32> to vector<8x255xf32>
    %23 = vector.extract_strided_slice %17 {offsets = [0, 0], sizes = [8, 1], strides = [1, 1]} : vector<8x256xf32> to vector<8x1xf32>
    %24 = tpu.concatenate %22, %23 in 1 : vector<8x255xf32>, vector<8x1xf32> -> vector<8x256xf32>
    %25 = vector.broadcast %21 : f32 to vector<8x256xf32>
    %26 = arith.mulf %25, %24 : vector<8x256xf32>
    %27 = arith.addf %20, %26 : vector<8x256xf32>
    %c2_4 = arith.constant 2 : index
    %28 = memref.load %arg2[%c2_4] : memref<3xf32, #tpu.memory_space<smem>>
    %29 = vector.extract_strided_slice %17 {offsets = [0, 2], sizes = [8, 254], strides = [1, 1]} : vector<8x256xf32> to vector<8x254xf32>
    %30 = vector.extract_strided_slice %17 {offsets = [0, 0], sizes = [8, 2], strides = [1, 1]} : vector<8x256xf32> to vector<8x2xf32>
    %31 = tpu.concatenate %29, %30 in 1 : vector<8x254xf32>, vector<8x2xf32> -> vector<8x256xf32>
    %32 = vector.broadcast %28 : f32 to vector<8x256xf32>
    %33 = arith.mulf %32, %31 : vector<8x256xf32>
    %34 = arith.addf %27, %33 : vector<8x256xf32>
    %c0_5 = arith.constant 0 : index
    %c0_6 = arith.constant 0 : index
    %35 = vector.load %arg4[%c0_5, %c0_6] : memref<8x256xf32, #tpu.memory_space<vmem>>, vector<8x256xf32>
    tpu.vector_store %arg4[%c0_5, %c0_6], %34 {strides = array<i32>} : memref<8x256xf32, #tpu.memory_space<vmem>>, vector<8x256xf32>,
    return
  }
  func.func @transform_0(%arg0: i32) -> i32 {
    %c0_i32 = arith.constant 0 : i32
    %c0_i32_0 = arith.constant 0 : i32
    return %c0_i32 : i32
  }
  func.func @transform_1(%arg0: i32) -> i32 {
    %c0_i32 = arith.constant 0 : i32
    %c0_i32_0 = arith.constant 0 : i32
    return %c0_i32 : i32
  }
  func.func @transform_2(%arg0: i32) -> (i32, i32) {
    %c0_i32 = arith.constant 0 : i32
    %c0_i32_0 = arith.constant 0 : i32
    return %arg0, %c0_i32 : i32, i32
  }
  func.func @transform_3(%arg0: i32) -> (i32, i32) {
    %c0_i32 = arith.constant 0 : i32
    %c0_i32_0 = arith.constant 0 : i32
    return %arg0, %c0_i32 : i32, i32
  }
}

</mosaic_0001>

<bundles_post_ra>
// kernel: tpu_custom_call.1
= control target key start
LH: loop header
LB: loop body
LE: loop exit
PB: predicated region body
PF: predicated region fallthrough
CT: control target
= control target key end

     0   :  { %8 = vsyncpa [#allocation5], 0  ;;  %s285_s0 = inlined_call_operand.hbm [shape: f32[3], index: 0, kind: input, shape index: {}]   ;;  %s286_s1 = inlined_call_operand.hbm [shape: f32[3], index: 1, kind: input, shape index: {}]   ;;  %s287_s2 = inlined_call_operand.hbm [shape: f32[8,256], index: 2, kind: input, shape index: {}]   ;;  %s288_s3 = inlined_call_operand.hbm [shape: f32[8,256], index: 3, kind: output, shape index: {}]  }
   0x1   :  { %9 = vsyncpa [#allocation7], 0 }
   0x2   :  { %10 = vsyncpa [#allocation3], 0 }
   0x3   :  { %11 = vsyncpa [#allocation4], 0  ;;  %s17_s14 = sshll.u32 %s285_s0, 4  ;;  %s26_s17 = sshll.u32 %s286_s1, 4  ;;  %s18_s14 = int_to_ptr.hbm [resolvable:$true] %s17_s14  ;;  %s27_s17 = int_to_ptr.hbm [resolvable:$true] %s26_s17 }
   0x4   :  { %s245_s18 = smov [#allocation2]   ;;  %s246_s19 = smov [#allocation6]  }
   0x5   :  { %20 = dma.hbm_to_smem %s18_s14, 16, %s245_s18, [#allocation5]  }
   0x6   :  { %29 = dma.hbm_to_smem %s27_s17, 16, %s246_s19, [#allocation7]  }
   0x7   :  { %s35_s22 = sshll.u32 %s287_s2, 4  ;;  %s247_s23 = smov [#allocation8]   ;;  %s36_s22 = int_to_ptr.hbm [resolvable:$true] %s35_s22 }
   0x8   :  { %s37_s24 = sshll.u32 %s247_s23, 4  ;;  %s38_s24 = int_to_ptr.vmem [resolvable:$true] %s37_s24 }
   0x9   :  { %40 = dma.hbm_to_vmem [thread:$0]  %s36_s22, 256, %s38_s24, [#allocation3]  }
   0xa   :  { %237 = dma.done.wait [#allocation5], 16  }
   0xb   :  { %238 = vsyncadd [#allocation5], 4294967280 }
   0xc   :  { %239 = dma.done.wait [#allocation7], 16  }
   0xd   :  { %240 = vsyncadd [#allocation7], 4294967280 }
   0xe   :  { %241 = dma.done.wait [#allocation3], 256  }
   0xf   :  { %242 = vsyncadd [#allocation3], 4294967040 }
  0x10   :  { %53 = sfence }
  0x11   :  { %v54_v0 = vld [vmem:[#allocation8] sm:$0xff]  ;;  %s248_s0 = smov 96   ;;  %s249_s1 = smov 112   ;;  %v55_v1 = vld [vmem:[#allocation8 + $0x8] sm:$0xff]  ;;  %vm83_vm0 = vcmask 785408   ;;  %vm67_vm1 = vcmask 916480  }
  0x12   :  { %79 = vrot.lane.b32.xlu1 %v54_v0, %s248_s0  ;;  %63 = vrot.lane.b32.xlu0 %v54_v0, %s249_s1  ;;  %s56_s2 = sld [smem:[#allocation2]]  ;;  %s250_s27 = smov 126   ;;  %vm105_vm2 = vcmask 1039360   ;;  %vm121_vm3 = vcmask 1031168  }
  0x13   :  { %s153_s25 = sld [smem:[#allocation2 + $0x1]]  ;;  %s251_s28 = smov 127  }
  0x14   :  { %s154_s26 = sld [smem:[#allocation2 + $0x2]]  ;;  %s252_s5 = smov [#allocation9]  }
  0x15   :  { %s155_s29 = sld [smem:[#allocation6 + $0x1]]  ;;  %s139_s6 = sshll.u32 %s252_s5, 4  ;;  %s140_s6 = int_to_ptr.vmem [resolvable:$true] %s139_s6 }
  0x16   :  { %s94_s30 = sld [smem:[#allocation6]]  ;;  %s141_s9 = sshll.u32 %s288_s3, 4  ;;  %s142_s9 = int_to_ptr.hbm [resolvable:$true] %s141_s9 }
  0x17   :  { %s156_s4 = sld [smem:[#allocation6 + $0x2]] }
  0x18   :  { %v57_v4 = vstv %s56_s2 }
  0x19   :  { %v73_v6 = vstv %s153_s25  ;;  %v58_v7 = vmul.f32 %v57_v4, %v54_v0  ;;  %v59_v8 = vmul.f32 %v57_v4, %v55_v1 }
  0x1a   :  { %81 = vrot.lane.b32.xlu1 %v55_v1, %s248_s0  ;;  %65 = vrot.lane.b32.xlu0 %v55_v1, %s249_s1  ;;  %v89_v9 = vstv %s154_s26 }
  0x1b   :  { %v111_v25 = vstv %s155_s29 }
  0x1c   :  { %v95_v28 = vstv %s94_s30 }
  0x1d   :  { %v127_v31 = vstv %s156_s4 }
  0x84   :  { %v80_v2 = vpop.permute.xlu1 %79  ;;  %v64_v3 = vpop.permute.xlu0 %63 }
  0x8c   :  { %v82_v5 = vpop.permute.xlu1 %81  ;;  %v66_v10 = vpop.permute.xlu0 %65 }
  0x8d   :  { %v84_v11 = vsel %vm83_vm0, %v80_v2, %v82_v5  ;;  %v88_v12 = vsel %vm83_vm0, %v82_v5, %v80_v2  ;;  %v68_v13 = vsel %vm67_vm1, %v64_v3, %v66_v10  ;;  %v72_v14 = vsel %vm67_vm1, %v66_v10, %v64_v3 }
  0x8e   :  { %v74_v15 = vmul.f32 %v73_v6, %v68_v13  ;;  %v75_v16 = vmul.f32 %v73_v6, %v72_v14  ;;  %v90_v17 = vmul.f32 %v89_v9, %v84_v11  ;;  %v91_v18 = vmul.f32 %v89_v9, %v88_v12 }
  0x90   :  { %v76_v19 = vadd.f32 %v74_v15, %v58_v7  ;;  %v77_v20 = vadd.f32 %v75_v16, %v59_v8 }
  0x92   :  { %v93_v21 = vadd.f32 %v91_v18, %v77_v20  ;;  %v92_v22 = vadd.f32 %v90_v17, %v76_v19 }
  0x94   :  { %119 = vrot.lane.b32.xlu1 %v93_v21, %s250_s27  ;;  %117 = vrot.lane.b32.xlu0 %v92_v22, %s250_s27  ;;  %v97_v32 = vmul.f32 %v95_v28, %v93_v21  ;;  %v96_v33 = vmul.f32 %v95_v28, %v92_v22 }
  0x95   :  { %101 = vrot.lane.b32.xlu2 %v92_v22, %s251_s28 }
  0x9d   :  { %103 = vrot.lane.b32.xlu2 %v93_v21, %s251_s28 }
  0xef   :  { %v102_v23 = vpop.permute.xlu2 %101 }
  0xf7   :  { %v104_v24 = vpop.permute.xlu2 %103 }
  0xf8   :  { %v106_v26 = vsel %vm105_vm2, %v102_v23, %v104_v24  ;;  %v110_v27 = vsel %vm105_vm2, %v104_v24, %v102_v23 }
  0xf9   :  { %v112_v29 = vmul.f32 %v111_v25, %v106_v26  ;;  %v113_v30 = vmul.f32 %v111_v25, %v110_v27 }
  0xfb   :  { %v114_v38 = vadd.f32 %v112_v29, %v96_v33  ;;  %v115_v39 = vadd.f32 %v113_v30, %v97_v32 }
 0x106   :  { %v120_v34 = vpop.permute.xlu1 %119  ;;  %v118_v35 = vpop.permute.xlu0 %117 }
 0x107   :  { %v122_v36 = vsel %vm121_vm3, %v118_v35, %v120_v34  ;;  %v126_v37 = vsel %vm121_vm3, %v120_v34, %v118_v35 }
 0x108   :  { %v128_v40 = vmul.f32 %v127_v31, %v122_v36  ;;  %v129_v41 = vmul.f32 %v127_v31, %v126_v37 }
 0x10a   :  { %v130_v42 = vadd.f32 %v128_v40, %v114_v38  ;;  %v131_v43 = vadd.f32 %v129_v41, %v115_v39 }
 0x10c   :  { %132 = vst [vmem:[#allocation9] sm:$0xff] %v130_v42 }
 0x10d   :  { %133 = vst [vmem:[#allocation9 + $0x8] sm:$0xff] %v131_v43 }
 0x10e   :  { %144 = dma.vmem_to_hbm [thread:$0]  %s140_s6, 256, %s142_s9, [#allocation4]  }
 0x10f   :  { %243 = dma.done.wait [#allocation4], 256  }
 0x110   :  { %244 = vsyncadd [#allocation4], 4294967040 }
 0x111   :  { %149 = vsyncpa [#allocation3], 1 }
 0x112   :  { %150 = vsyncpa [#allocation4], 1 }
 0x113   :  { %151 = vsyncpa [#allocation5], 1 }
 0x114   :  { %152 = vsyncpa [#allocation7], 1 }

</bundles_post_ra>
